<compile_context>
chip_gen: v5e
topology: v5e:2x2
jax: 0.10.0
libtpu: 0.0.40
codegen_flags: <defaults>
</compile_context>

<pallas_src>
import jax
import jax.numpy as jnp
from jax.experimental import pallas as pl
from jax.experimental.pallas import tpu as pltpu


def transition3d_kernel(x_ref, aff_ref, w_ref, out_ref):
    """x_ref:  (TB, S, 8*Cin)   pooling-window-flattened, channels-fastest
       aff_ref:(2, 8*Cin)       row 0 = BN scale (tiled x8), row 1 = BN bias (tiled x8)
       w_ref:  (8*Cin, Cout)    tile(conv_w.T, 8) / 8  (avg-pool fused into the conv)
       out_ref:(TB, S, Cout)"""
    f32 = jnp.float32
    scale = aff_ref[0:1, :]                    # (1, 8*Cin)
    bias = aff_ref[1:2, :]                     # (1, 8*Cin)

    x = x_ref[...]                             # (TB, S, 8*Cin)
    tb, s, kc = x.shape

    # BatchNorm (inference, folded) + ReLU  -- pure VPU work
    y = jnp.maximum(x * scale + bias, 0.0)

    # avg-pool(2,2,2) + 1x1x1 conv fused into a single MXU matmul
    o = jnp.dot(y.reshape(tb * s, kc), w_ref[...],
                preferred_element_type=f32)    # (TB*S, Cout)

    out_ref[...] = o.reshape(tb, s, -1)


def _pick_tb(B, S):
    """Batch-tile size: amortize per-step overhead (target >= ~512 matmul rows per
    step), but keep >= 2 parallel grid steps when B allows (two TCs on v7x)."""
    target = max(1, -(-512 // S))              # ceil(512 / S)
    tb = 1
    for d in range(1, B + 1):
        if B % d == 0 and d <= target:
            tb = d
    if B // tb < 2:
        for d in range(tb, 0, -1):
            if B % d == 0 and B // d >= 2:
                tb = d
                break
    return tb


def transition3d_forward(x, gamma, beta, running_mean, running_var, conv_w, eps=1e-5):
    """Forward pass of Transition3D.  x: (B, C_in, D, H, W) -> (B, C_out, D/2, H/2, W/2)."""
    B, C_in, D, H, W = x.shape
    C_out = conv_w.shape[0]
    assert D % 2 == 0 and H % 2 == 0 and W % 2 == 0
    Dh, Hh, Wh = D // 2, H // 2, W // 2
    S = Dh * Hh * Wh
    KC = 8 * C_in

    # ---- glue: fold BN (inference) into per-channel scale/bias, tiled per window tap
    scale = gamma * jax.lax.rsqrt(running_var + eps)
    bias = beta - running_mean * scale
    affine = jnp.stack([jnp.tile(scale, 8), jnp.tile(bias, 8)], axis=0)    # (2, 8*Cin)

    # ---- glue: fuse avg-pool + pointwise conv (both linear; conv acts per-voxel,
    #      so they commute) into one (8*Cin, Cout) weight
    wt = conv_w.reshape(C_out, C_in).T                                     # (Cin, Cout)
    w_big = jnp.tile(wt, (8, 1)) * 0.125                                   # (8*Cin, Cout)

    # ---- glue: layout plumbing -- channels-last, each 2x2x2 pooling window
    #      flattened onto the lane axis: (B, S, 8*Cin)
    xr = jnp.transpose(x, (0, 2, 3, 4, 1))                                 # (B, D, H, W, C)
    xr = xr.reshape(B, Dh, 2, Hh, 2, Wh, 2, C_in)
    xr = jnp.transpose(xr, (0, 1, 3, 5, 2, 4, 6, 7))                       # (B,Dh,Hh,Wh,2,2,2,C)
    xr = xr.reshape(B, S, KC)

    TB = _pick_tb(B, S)
    grid = (B // TB,)

    out = pl.pallas_call(
        transition3d_kernel,
        out_shape=jax.ShapeDtypeStruct((B, S, C_out), jnp.float32),
        grid_spec=pltpu.PrefetchScalarGridSpec(
            num_scalar_prefetch=0,
            grid=grid,
            in_specs=[
                pl.BlockSpec((TB, S, KC), lambda b: (b, 0, 0)),
                pl.BlockSpec((2, KC), lambda b: (0, 0)),
                pl.BlockSpec((KC, C_out), lambda b: (0, 0)),
            ],
            out_specs=pl.BlockSpec((TB, S, C_out), lambda b: (b, 0, 0)),
        ),
        compiler_params=pltpu.CompilerParams(dimension_semantics=("parallel",)),
    )(xr, affine, w_big)

    # ---- glue: back to PyTorch NCDHW layout
    out = out.reshape(B, Dh, Hh, Wh, C_out)
    return jnp.transpose(out, (0, 4, 1, 2, 3))                             # (B, Cout, Dh, Hh, Wh)


def reference(x, gamma, beta, running_mean, running_var, conv_w, eps=1e-5):
    """Pure-JAX reference with the original PyTorch (NCDHW) semantics (eval-mode BN)."""
    C_in = x.shape[1]
    sh = (1, C_in, 1, 1, 1)
    y = (x - running_mean.reshape(sh)) * jax.lax.rsqrt(running_var.reshape(sh) + eps)
    y = y * gamma.reshape(sh) + beta.reshape(sh)
    y = jnp.maximum(y, 0.0)
    o = jnp.einsum('bcdhw,oc->bodhw', y, conv_w.reshape(conv_w.shape[0], C_in))
    B, Co, D, H, W = o.shape
    o = o.reshape(B, Co, D // 2, 2, H // 2, 2, W // 2, 2).mean(axis=(3, 5, 7))
    return o


if __name__ == "__main__":
    key = jax.random.PRNGKey(0)
    ks = jax.random.split(key, 6)
    B, C_in, C_out = 2, 8, 4
    D, H, W = 4, 8, 16

    x = jax.random.normal(ks[0], (B, C_in, D, H, W), jnp.float32)
    gamma = 1.0 + 0.1 * jax.random.normal(ks[1], (C_in,), jnp.float32)
    beta = 0.1 * jax.random.normal(ks[2], (C_in,), jnp.float32)
    running_mean = 0.1 * jax.random.normal(ks[3], (C_in,), jnp.float32)
    running_var = jnp.abs(1.0 + 0.1 * jax.random.normal(ks[4], (C_in,), jnp.float32))
    conv_w = 0.1 * jax.random.normal(ks[5], (C_out, C_in, 1, 1, 1), jnp.float32)

    fwd = jax.jit(transition3d_forward)
    out = jax.block_until_ready(fwd(x, gamma, beta, running_mean, running_var, conv_w))
    ref = reference(x, gamma, beta, running_mean, running_var, conv_w)

    assert out.shape == (B, C_out, D // 2, H // 2, W // 2), out.shape
    err = float(jnp.max(jnp.abs(out - ref)))
    assert jnp.allclose(out, ref, atol=1e-4, rtol=1e-4), err
    print("KERNEL_OK")
</pallas_src>

<mosaic_0001>
module attributes {stable_mosaic.version = 11 : i64} {
  func.func @transition3d_kernel(%arg0: i32, %arg1: memref<1x64x64xf32, #tpu.memory_space<vmem>>, %arg2: memref<2x64xf32, #tpu.memory_space<vmem>>, %arg3: memref<64x4xf32, #tpu.memory_space<vmem>>, %arg4: memref<1x64x4xf32, #tpu.memory_space<vmem>>) attributes {dimension_semantics = [#tpu.dimension_semantics<parallel>], iteration_bounds = array<i64: 2>, scalar_prefetch = 0 : i64, scratch_operands = 0 : i64, tpu.core_type = #tpu.core_type<tc>, window_params = [{transform_indices = @transform_0, window_bounds = array<i64: 1, 64, 64>}, {pipeline_mode = #tpu.pipeline_mode<synchronous>, transform_indices = @transform_1, window_bounds = array<i64: 2, 64>}, {pipeline_mode = #tpu.pipeline_mode<synchronous>, transform_indices = @transform_2, window_bounds = array<i64: 64, 4>}, {transform_indices = @transform_3, window_bounds = array<i64: 1, 64, 4>}]} {
    %c0 = arith.constant 0 : index
    %c0_0 = arith.constant 0 : index
    %0 = vector.load %arg2[%c0, %c0_0] : memref<2x64xf32, #tpu.memory_space<vmem>>, vector<1x64xf32>
    %c1 = arith.constant 1 : index
    %c0_1 = arith.constant 0 : index
    %1 = vector.load %arg2[%c1, %c0_1] : memref<2x64xf32, #tpu.memory_space<vmem>>, vector<1x64xf32>
    %c0_2 = arith.constant 0 : index
    %c0_3 = arith.constant 0 : index
    %c0_4 = arith.constant 0 : index
    %2 = vector.load %arg1[%c0_2, %c0_3, %c0_4] : memref<1x64x64xf32, #tpu.memory_space<vmem>>, vector<1x64x64xf32>
    %3 = vector.shape_cast %0 : vector<1x64xf32> to vector<1x1x64xf32>
    %4 = vector.broadcast %3 : vector<1x1x64xf32> to vector<1x64x64xf32>
    %5 = arith.mulf %2, %4 : vector<1x64x64xf32>
    %6 = vector.shape_cast %1 : vector<1x64xf32> to vector<1x1x64xf32>
    %7 = vector.broadcast %6 : vector<1x1x64xf32> to vector<1x64x64xf32>
    %8 = arith.addf %5, %7 : vector<1x64x64xf32>
    %cst = arith.constant 0.000000e+00 : f32
    %9 = vector.broadcast %cst : f32 to vector<1x64x64xf32>
    %10 = arith.maximumf %8, %9 : vector<1x64x64xf32>
    %11 = vector.shape_cast %10 : vector<1x64x64xf32> to vector<64x64xf32>
    %c0_5 = arith.constant 0 : index
    %c0_6 = arith.constant 0 : index
    %12 = vector.load %arg3[%c0_5, %c0_6] : memref<64x4xf32, #tpu.memory_space<vmem>>, vector<64x4xf32>
    %cst_7 = arith.constant dense<0.000000e+00> : vector<64x4xf32>
    %13 = tpu.matmul %11, %12, %cst_7 {dimension_numbers = #tpu.dot_dimension_numbers<[1], [0], [0], [1], [0, 0, 1, 1], [], []>} : vector<64x64xf32>, vector<64x4xf32>, vector<64x4xf32> -> vector<64x4xf32>
    %14 = vector.shape_cast %13 : vector<64x4xf32> to vector<1x64x4xf32>
    %c0_8 = arith.constant 0 : index
    %c0_9 = arith.constant 0 : index
    %c0_10 = arith.constant 0 : index
    %15 = vector.load %arg4[%c0_8, %c0_9, %c0_10] : memref<1x64x4xf32, #tpu.memory_space<vmem>>, vector<1x64x4xf32>
    tpu.vector_store %arg4[%c0_8, %c0_9, %c0_10], %14 {strides = array<i32>} : memref<1x64x4xf32, #tpu.memory_space<vmem>>, vector<1x64x4xf32>,
    return
  }
  func.func @transform_0(%arg0: i32) -> (i32, i32, i32) {
    %c0_i32 = arith.constant 0 : i32
    %c0_i32_0 = arith.constant 0 : i32
    %c0_i32_1 = arith.constant 0 : i32
    return %arg0, %c0_i32, %c0_i32_0 : i32, i32, i32
  }
  func.func @transform_1(%arg0: i32) -> (i32, i32) {
    %c0_i32 = arith.constant 0 : i32
    %c0_i32_0 = arith.constant 0 : i32
    %c0_i32_1 = arith.constant 0 : i32
    return %c0_i32, %c0_i32_0 : i32, i32
  }
  func.func @transform_2(%arg0: i32) -> (i32, i32) {
    %c0_i32 = arith.constant 0 : i32
    %c0_i32_0 = arith.constant 0 : i32
    %c0_i32_1 = arith.constant 0 : i32
    return %c0_i32, %c0_i32_0 : i32, i32
  }
  func.func @transform_3(%arg0: i32) -> (i32, i32, i32) {
    %c0_i32 = arith.constant 0 : i32
    %c0_i32_0 = arith.constant 0 : i32
    %c0_i32_1 = arith.constant 0 : i32
    return %arg0, %c0_i32, %c0_i32_0 : i32, i32, i32
  }
}

</mosaic_0001>

<bundles_post_ra>
// kernel: tile.22
= control target key start
LH: loop header
LB: loop body
LE: loop exit
PB: predicated region body
PF: predicated region fallthrough
CT: control target
= control target key end

     0   :  { %s22_s0 = inlined_call_operand.vmem [shape: f32[8], index: 0, kind: input, shape index: {}]   ;;  %s23_s1 = inlined_call_operand.vmem [shape: f32[8,8], index: 1, kind: output, shape index: {}]  }
   0x1   :  { %v4_v0 = vld [vmem:[%s22_s0] ss:$0 sm:$0xff] }
   0x2   :  { %5 = vst [vmem:[%s23_s1] sm:$0xff] %v4_v0 }

// kernel: tile.24
= control target key start
LH: loop header
LB: loop body
LE: loop exit
PB: predicated region body
PF: predicated region fallthrough
CT: control target
= control target key end

     0   :  { %s67_s10 = smov 56   ;;  %s68_s11 = smov 40   ;;  %vm3_vm0 = vcmask 64512   ;;  %vm9_vm1 = vcmask 523712   ;;  %vm15_vm2 = vcmask 458112   ;;  %vm21_vm3 = vcmask 392512   ;;  %s111_s0 = inlined_call_operand.vmem [shape: f32[8,8], index: 0, kind: input, shape index: {}]   ;;  %s112_s1 = inlined_call_operand.vmem [shape: f32[1,64], index: 1, kind: output, shape index: {}]  }
   0x1   :  { %v53_v0 = vld [vmem:[%s111_s0 + $0x7] sm:$0x1]   ;;  %v55_v1 = vld [vmem:[%s111_s0 + $0x5] sm:$0x1]   ;;  %v57_v2 = vld [vmem:[%s111_s0 + $0x3] sm:$0x1]  }
   0x2   :  { %7 = vrot.lane.b32.xlu0 %v53_v0, %s67_s10  ;;  %19 = vrot.lane.b32.xlu1 %v55_v1, %s68_s11  ;;  %s69_s14 = smov 24   ;;  %v54_v3 = vld [vmem:[%s111_s0 + $0x6] sm:$0x1]   ;;  %v56_v4 = vld [vmem:[%s111_s0 + $0x4] sm:$0x1]   ;;  %s70_s21 = smov 48  }
   0x3   :  { %31 = vrot.lane.b32.xlu2 %v57_v2, %s69_s14  ;;  %v58_v5 = vld [vmem:[%s111_s0 + $0x2] sm:$0x1]   ;;  %s71_s22 = smov 32   ;;  %s72_s23 = smov 16   ;;  %v59_v6 = vld [vmem:[%s111_s0 + $0x1] sm:$0x1]  }
   0x4   :  { %s73_s26 = smov 8   ;;  %v2_v7 = vld [vmem:[%s111_s0] sm:$0x1]   ;;  %vm27_vm4 = vcmask 326912   ;;  %vm33_vm5 = vcmask 261312   ;;  %vm39_vm6 = vcmask 195712  }
   0x5   :  { %4 = vst.msk [vmem:[#allocation0] sm:$0x1] %vm3_vm0, %v2_v7   ;;  %vm45_vm7 = vcmask 130112  }
   0xa   :  { %13 = vrot.lane.b32.xlu0 %v54_v3, %s70_s21  ;;  %25 = vrot.lane.b32.xlu1 %v56_v4, %s71_s22 }
   0xb   :  { %37 = vrot.lane.b32.xlu2 %v58_v5, %s72_s23 }
  0x12   :  { %43 = vrot.lane.b32.xlu0 %v59_v6, %s73_s26 }
  0x5d   :  { %v32_v8 = vpop.permute.xlu2 %31  }
  0x65   :  { %v38_v9 = vpop.permute.xlu2 %37  }
  0x74   :  { %v8_v10 = vpop.permute.xlu0 %7   ;;  %v20_v11 = vpop.permute.xlu1 %19  }
  0x75   :  { %10 = vst.msk [vmem:[#allocation0] sm:$0x1] %vm9_vm1, %v8_v10  }
  0x7c   :  { %v14_v12 = vpop.permute.xlu0 %13   ;;  %v26_v13 = vpop.permute.xlu1 %25  }
  0x7d   :  { %16 = vst.msk [vmem:[#allocation0] sm:$0x1] %vm15_vm2, %v14_v12  }
  0x7e   :  { %22 = vst.msk [vmem:[#allocation0] sm:$0x1] %vm21_vm3, %v20_v11  }
  0x7f   :  { %28 = vst.msk [vmem:[#allocation0] sm:$0x1] %vm27_vm4, %v26_v13  }
  0x80   :  { %34 = vst.msk [vmem:[#allocation0] sm:$0x1] %vm33_vm5, %v32_v8  }
  0x81   :  { %40 = vst.msk [vmem:[#allocation0] sm:$0x1] %vm39_vm6, %v38_v9  }
  0x84   :  { %v44_v14 = vpop.permute.xlu0 %43  }
  0x85   :  { %46 = vst.msk [vmem:[#allocation0] sm:$0x1] %vm45_vm7, %v44_v14  }
  0x8c   :  { %v49_v15 = vld [vmem:[#allocation0] sm:$0x1] }
  0x8d   :  { %52 = vst [vmem:[%s112_s1] sm:$0x1] %v49_v15 }

// kernel: transition3d_forward.1
= control target key start
LH: loop header
LB: loop body
LE: loop exit
PB: predicated region body
PF: predicated region fallthrough
CT: control target
= control target key end

     0   :  { %s428_s12 = smov 0   ;;  %s508_s0 = inlined_call_operand.vmem [shape: f32[2,64,64], index: 0, kind: input, shape index: {}]   ;;  %s509_s1 = inlined_call_operand.vmem [shape: f32[2,64], index: 1, kind: input, shape index: {}]   ;;  %s510_s2 = inlined_call_operand.vmem [shape: f32[64,4], index: 2, kind: input, shape index: {}]   ;;  %s511_s3 = inlined_call_operand.vmem [shape: f32[2,64,4], index: 3, kind: output, shape index: {}]  }
   0x1 LB: > { %s345_s13 = sadd.s32 4294967295, %s406_s12   ;;  %p349_p0 = scmp.ge.s32.totalorder %s406_s12, 1  ;;  %s406_s12 = sphi %s428_s12, %s13_s12  }
   0x2   : > { %p137_p1 = scmp.lt.s32.totalorder %s406_s12, 3 }
   0x4   : > { %p138_p2 = pnand %p349_p0, %p137_p1 }
   0x5   : > { %p161_p3 = scmp.lt.s32.totalorder (!%p138_p2), %s345_s13, 1 }
   0x6   : > { %141 = sbr.rel (%p138_p2) target bundleno = 169 (0xa9), region = 32 }
   0xb   : > { %v214_v0 = vld [vmem:[%s510_s2 + $0x38] sm:$0xff]  ;;  %v213_v1 = vld [vmem:[%s510_s2 + $0x30] sm:$0xff]  ;;  %v212_v2 = vld [vmem:[%s510_s2 + $0x28] sm:$0xff]  ;;  %s513_s13 = smov (!%p161_p3, %s345_s13), 1  ;;  %vm215_vm0 = vcmask 523264   ;;  %vm281_vm1 = vcmask 31744  }
   0xc   : > { %367 = vmatpush.msra.mxu2 %v214_v0  ;;  %368 = vmatpush.msra.mxu3 %v214_v0  ;;  %v398_v3 = vld [vmem:[%s509_s1] ss:$0 sm:$0xff]  ;;  %s364_s24 = sshll.u32 %s513_s13, 6  ;;  %v210_v5 = vld [vmem:[%s510_s2 + $0x18] sm:$0xff]  ;;  %v399_v6 = vld [vmem:[%s509_s1 + $0x1] ss:$0 sm:$0xff] }
   0xd   : > { %248 = vmatpush.msra.mxu0 %v214_v0  ;;  %366 = vmatpush.msra.mxu1 %v214_v0  ;;  %v211_v4 = vld [vmem:[%s510_s2 + $0x20] sm:$0xff]  ;;  %s462_s29 = scalar_lea.vmem %s508_s0, %s364_s24  ;;  %v209_v14 = vld [vmem:[%s510_s2 + $0x10] sm:$0xff]  ;;  %v208_v20 = vld [vmem:[%s510_s2 + $0x8] sm:$0xff]  ;;  %s170_s15 = scalar_lea.vmem %s511_s3, %s364_s24 }
   0xe   : > { %370 = vmatpush.msra.mxu2 %v213_v1  ;;  %371 = vmatpush.msra.mxu3 %v213_v1  ;;  %v177_v7 = vld [vmem:[%s462_s29 + $0x20] sm:$0xff]  ;;  %v179_v8 = vld [vmem:[%s462_s29 + $0x30] sm:$0xff]  ;;  %v178_v18 = vld [vmem:[%s462_s29 + $0x28] sm:$0xff] }
   0xf   : > { %249 = vmatpush.msra.mxu0 %v213_v1  ;;  %369 = vmatpush.msra.mxu1 %v213_v1  ;;  %v173_v9 = vld [vmem:[%s462_s29] sm:$0xff]  ;;  %v186_v10 = vmul.f32 %v398_v3, %v177_v7  ;;  %v188_v11 = vmul.f32 %v398_v3, %v179_v8  ;;  %v175_v13 = vld [vmem:[%s462_s29 + $0x10] sm:$0xff]  ;;  %v180_v19 = vld [vmem:[%s462_s29 + $0x38] sm:$0xff]  ;;  %v187_v28 = vmul.f32 %v398_v3, %v178_v18 }
  0x10   : > { %373 = vmatpush.msra.mxu2 %v212_v2  ;;  %374 = vmatpush.msra.mxu3 %v212_v2  ;;  %v182_v12 = vmul.f32 %v398_v3, %v173_v9  ;;  %v184_v15 = vmul.f32 %v398_v3, %v175_v13  ;;  %v174_v23 = vld [vmem:[%s462_s29 + $0x8] sm:$0xff]  ;;  %v176_v24 = vld [vmem:[%s462_s29 + $0x18] sm:$0xff]  ;;  %v207_v25 = vld [vmem:[%s510_s2] sm:$0xff]  ;;  %v189_v29 = vmul.f32 %v398_v3, %v180_v19 }
  0x11   : > { %250 = vmatpush.msra.mxu0 %v212_v2  ;;  %372 = vmatpush.msra.mxu1 %v212_v2  ;;  %v195_v16 = vadd.f32 %v399_v6, %v186_v10  ;;  %v197_v17 = vadd.f32 %v399_v6, %v188_v11  ;;  %v183_v32 = vmul.f32 %v398_v3, %v174_v23 }
  0x12   : > { %376 = vmatpush.msra.mxu2 %v211_v4  ;;  %377 = vmatpush.msra.mxu3 %v211_v4  ;;  %v191_v21 = vadd.f32 %v399_v6, %v182_v12  ;;  %v193_v22 = vadd.f32 %v399_v6, %v184_v15  ;;  %v185_v33 = vmul.f32 %v398_v3, %v176_v24 }
  0x13   : > { %251 = vmatpush.msra.mxu0 %v211_v4  ;;  %375 = vmatpush.msra.mxu1 %v211_v4  ;;  %v203_v26 = vmax.f32 %v195_v16, 0.0  ;;  %v205_v27 = vmax.f32 %v197_v17, 0.0  ;;  %v196_v34 = vadd.f32 %v399_v6, %v187_v28  ;;  %v198_v35 = vadd.f32 %v399_v6, %v189_v29 }
  0x14   : > { %379 = vmatpush.msra.mxu2 %v210_v5  ;;  %380 = vmatpush.msra.mxu3 %v210_v5  ;;  %v199_v30 = vmax.f32 %v191_v21, 0.0  ;;  %v201_v31 = vmax.f32 %v193_v22, 0.0  ;;  %v192_v36 = vadd.f32 %v399_v6, %v183_v32  ;;  %v194_v37 = vadd.f32 %v399_v6, %v185_v33 }
  0x15   : > { %252 = vmatpush.msra.mxu0 %v210_v5  ;;  %378 = vmatpush.msra.mxu1 %v210_v5  ;;  %v204_v38 = vmax.f32 %v196_v34, 0.0  ;;  %v206_v39 = vmax.f32 %v198_v35, 0.0 }
  0x16   : > { %382 = vmatpush.msra.mxu2 %v209_v14  ;;  %383 = vmatpush.msra.mxu3 %v209_v14  ;;  %v200_v40 = vmax.f32 %v192_v36, 0.0  ;;  %v202_v41 = vmax.f32 %v194_v37, 0.0 }
  0x17   : > { %253 = vmatpush.msra.mxu0 %v209_v14  ;;  %381 = vmatpush.msra.mxu1 %v209_v14 }
  0x18   : > { %385 = vmatpush.msra.mxu2 %v208_v20  ;;  %386 = vmatpush.msra.mxu3 %v208_v20 }
  0x19   : > { %254 = vmatpush.msra.mxu0 %v208_v20  ;;  %384 = vmatpush.msra.mxu1 %v208_v20 }
  0x1a   : > { %388 = vmatpush.msra.mxu2 %v207_v25  ;;  %389 = vmatpush.msra.mxu3 %v207_v25 }
  0x1b   : > { %358 = vmatmul.msk.f32.vlgmr.msra.gmra.mxu2 %vm215_vm0, %v203_v26  ;;  %360 = vmatmul.msk.f32.vlgmr.msra.gmra.mxu3 %vm215_vm0, %v205_v27 }
  0x1c   : > { %255 = vmatpush.msra.mxu0 %v207_v25  ;;  %387 = vmatpush.msra.mxu1 %v207_v25 }
  0x1d   : > { %354 = vmatmul.msk.f32.vlgmr.msra.gmra.mxu0 %vm215_vm0, %v199_v30  ;;  %356 = vmatmul.msk.f32.vlgmr.msra.gmra.mxu1 %vm215_vm0, %v201_v31 }
  0x23   : > { %359 = vmatmul.msk.f32.gmra.mxu2 %vm215_vm0, %v204_v38  ;;  %361 = vmatmul.msk.f32.gmra.mxu3 %vm215_vm0, %v206_v39 }
  0x25   : > { %355 = vmatmul.msk.f32.gmra.mxu0 %vm215_vm0, %v200_v40  ;;  %357 = vmatmul.msk.f32.gmra.mxu1 %vm215_vm0, %v202_v41 }
  0x9a   : > { %v257_v42 = vpop.f32.mrf.mxu0  ;;  %v263_v43 = vpop.f32.mrf.mxu1 }
  0x9b   : > { %282 = vst.msk [vmem:[%s170_s15] sm:$0xff] %vm281_vm1, %v257_v42 }
  0x9c   : > { %284 = vst.msk [vmem:[%s170_s15 + $0x10] sm:$0xff] %vm281_vm1, %v263_v43 }
  0x9e   : > { %v269_v44 = vpop.f32.mrf.mxu2  ;;  %v275_v45 = vpop.f32.mrf.mxu3 }
  0x9f   : > { %286 = vst.msk [vmem:[%s170_s15 + $0x20] sm:$0xff] %vm281_vm1, %v269_v44 }
  0xa0   : > { %288 = vst.msk [vmem:[%s170_s15 + $0x30] sm:$0xff] %vm281_vm1, %v275_v45 }
  0xa2   : > { %v260_v46 = vpop.f32.mrf.mxu0  ;;  %v266_v47 = vpop.f32.mrf.mxu1 }
  0xa3   : > { %283 = vst.msk [vmem:[%s170_s15 + $0x8] sm:$0xff] %vm281_vm1, %v260_v46 }
  0xa4   : > { %285 = vst.msk [vmem:[%s170_s15 + $0x18] sm:$0xff] %vm281_vm1, %v266_v47 }
  0xa6   : > { %v272_v48 = vpop.f32.mrf.mxu2  ;;  %v278_v49 = vpop.f32.mrf.mxu3 }
  0xa7   : > { %287 = vst.msk [vmem:[%s170_s15 + $0x28] sm:$0xff] %vm281_vm1, %v272_v48 }
  0xa8   : > { %289 = vst.msk [vmem:[%s170_s15 + $0x38] sm:$0xff] %vm281_vm1, %v278_v49 }
  0xa9 PF: > { %s13_s12 = sadd.s32 1, %s406_s12  }
  0xaa   : > { %p10_p4 = scmp.ge.s32.totalorder %s13_s12, 4  }
  0xac   :  { %12 = sbr.rel (!%p10_p4) target bundleno = 1 (0x1), region = 62 }

</bundles_post_ra>
